<compile_context>
chip_gen: v7x
topology: tpu7x:2x2x1
jax: 0.10.0
libtpu: 0.0.40
codegen_flags: <defaults>
</compile_context>

<pallas_src>
import functools

import jax
import jax.numpy as jnp
from jax.experimental import pallas as pl
from jax.experimental.pallas import tpu as pltpu


def _round_up(x, m):
    return ((x + m - 1) // m) * m


def gene_selector_kernel(x_ref, w1_ref, b1_ref, w2_ref, b2_ref, w3_ref, b3_ref,
                         o_ref):
    # fc1 + ReLU  (bf16 inputs, f32 accumulate)
    h1 = jnp.dot(x_ref[...], w1_ref[...], preferred_element_type=jnp.float32)
    h1 = jnp.maximum(h1 + b1_ref[...], 0.0)
    # TODO(synk): dropout is identity in eval mode; train-mode stochastic
    # dropout would use pltpu.prng_seed + pltpu.stateful_bernoulli.

    # fc2 + ReLU
    h2 = jnp.dot(h1.astype(jnp.bfloat16), w2_ref[...],
                 preferred_element_type=jnp.float32)
    h2 = jnp.maximum(h2 + b2_ref[...], 0.0)

    # fc3 + sigmoid (f32 elementwise; padded lanes carry sigmoid(0)=0.5 and are
    # sliced off in the wrapper)
    logits = jnp.dot(h2.astype(jnp.bfloat16), w3_ref[...],
                     preferred_element_type=jnp.float32)
    o_ref[...] = jax.nn.sigmoid(logits + b3_ref[...])


def _pick_batch_tile(batch, input_dim, h1p, h2p, ncp, budget_bytes):
    """Largest TB (<=512, multiple of 16) whose resident+double-buffered
    footprint fits the VMEM budget."""
    weight_bytes = (input_dim * h1p + h1p * h2p + h2p * ncp) * 2  # bf16 weights
    weight_bytes += (h1p + h2p + ncp) * 4                          # f32 biases

    def fits(tb):
        x_bytes = 2 * tb * input_dim * 2          # double-buffered bf16 x tile
        o_bytes = 2 * tb * ncp * 4                # double-buffered f32 out tile
        inter_bytes = tb * (h1p + h2p + ncp) * 4  # in-flight f32 intermediates
        return weight_bytes + x_bytes + o_bytes + inter_bytes <= budget_bytes

    tb = 512  # multiple of 256 feeds the 256-row MXU on v6e/v7x
    while tb > 16 and not fits(tb):
        tb //= 2
    tb = min(tb, _round_up(batch, 16))
    return max(tb, 16), weight_bytes


def gene_selector_forward(x, params):
    """x: [B, input_dim] float32. params: dict of w1,b1,w2,b2,w3,b3 (f32,
    weights stored as [in, out]). Returns [B, num_classes] float32."""
    w1, b1 = params["w1"], params["b1"]
    w2, b2 = params["w2"], params["b2"]
    w3, b3 = params["w3"], params["b3"]

    B, input_dim = x.shape
    h1 = w1.shape[1]
    h2 = w2.shape[1]
    num_classes = w3.shape[1]

    # Lane-dense padded widths (multiples of 128).
    h1p = _round_up(h1, 128)
    h2p = _round_up(h2, 128)
    ncp = _round_up(num_classes, 128)

    # Zero-pad hidden / output widths; ReLU(0)=0 and zero weight rows keep the
    # padded lanes from affecting real outputs. Cast weights+x to bf16 (MXU
    # native, halves DMA bytes); keep biases f32.
    def pad2(a, r, c):
        return jnp.pad(a, ((0, r - a.shape[0]), (0, c - a.shape[1])))

    w1p = pad2(w1, input_dim, h1p).astype(jnp.bfloat16)
    w2p = pad2(w2, h1p, h2p).astype(jnp.bfloat16)
    w3p = pad2(w3, h2p, ncp).astype(jnp.bfloat16)
    b1p = pad2(b1, 1, h1p).astype(jnp.float32)
    b2p = pad2(b2, 1, h2p).astype(jnp.float32)
    b3p = pad2(b3, 1, ncp).astype(jnp.float32)

    # Batch tile sized against a VMEM budget that is safe on v5e/v6e/v7x.
    vmem_budget = 24 * 1024 * 1024
    TB, weight_bytes = _pick_batch_tile(B, input_dim, h1p, h2p, ncp, vmem_budget)
    Bp = _round_up(B, TB)
    xp = jnp.pad(x, ((0, Bp - B), (0, 0))).astype(jnp.bfloat16)

    needed = (weight_bytes + 2 * TB * input_dim * 2 + 2 * TB * ncp * 4
              + TB * (h1p + h2p + ncp) * 4 + (4 << 20))
    vmem_limit = int(min(max(needed, 16 << 20), 60 << 20))

    grid = (Bp // TB,)
    const = lambda shape: pl.BlockSpec(shape, lambda i: tuple(0 for _ in shape))

    # TODO(synk): for very large input_dim where the (TB, input_dim) x tile no
    # longer fits VMEM, add a second "arbitrary" grid axis over K for fc1 with
    # a VMEM f32 accumulator (P3 pattern) and run fc2/fc3 under pl.when(last).
    out_padded = pl.pallas_call(
        gene_selector_kernel,
        out_shape=jax.ShapeDtypeStruct((Bp, ncp), jnp.float32),
        grid_spec=pltpu.PrefetchScalarGridSpec(
            num_scalar_prefetch=0,
            grid=grid,
            in_specs=[
                pl.BlockSpec((TB, input_dim), lambda i: (i, 0)),  # x tile
                const(w1p.shape), const(b1p.shape),               # VMEM-resident
                const(w2p.shape), const(b2p.shape),
                const(w3p.shape), const(b3p.shape),
            ],
            out_specs=pl.BlockSpec((TB, ncp), lambda i: (i, 0)),
        ),
        compiler_params=pltpu.CompilerParams(
            dimension_semantics=("parallel",),
            vmem_limit_bytes=vmem_limit,
        ),
    )(xp, w1p, b1p, w2p, b2p, w3p, b3p)

    return out_padded[:B, :num_classes]


def init_params(key, input_dim, num_classes, hidden_dim1=128, hidden_dim2=64):
    """Deterministic synthetic params. Weights stored as [in, out]."""
    ks = jax.random.split(key, 6)

    def linear(kw, kb, fan_in, fan_out):
        # Mimic nn.Linear's uniform(-1/sqrt(fan_in), 1/sqrt(fan_in)) init.
        bound = 1.0 / jnp.sqrt(jnp.float32(fan_in))
        w = jax.random.uniform(kw, (fan_in, fan_out), jnp.float32, -bound, bound)
        b = jax.random.uniform(kb, (1, fan_out), jnp.float32, -bound, bound)
        return w, b

    w1, b1 = linear(ks[0], ks[1], input_dim, hidden_dim1)
    w2, b2 = linear(ks[2], ks[3], hidden_dim1, hidden_dim2)
    w3, b3 = linear(ks[4], ks[5], hidden_dim2, num_classes)
    return {"w1": w1, "b1": b1, "w2": w2, "b2": b2, "w3": w3, "b3": b3}


if __name__ == "__main__":
    key = jax.random.PRNGKey(0)
    k_x, k_p = jax.random.split(key)

    batch = 8
    input_dim = 32
    num_classes = 8

    x = jax.random.normal(k_x, (batch, input_dim), jnp.float32)
    params = init_params(k_p, input_dim, num_classes)

    fwd = jax.jit(functools.partial(gene_selector_forward))
    out = fwd(x, params)
    out = jax.block_until_ready(out)

    # Pure-JAX f32 reference (kernel uses bf16 inputs with f32 accumulation,
    # so compare with a loosened tolerance).
    h1 = jnp.maximum(x @ params["w1"] + params["b1"], 0.0)
    h2 = jnp.maximum(h1 @ params["w2"] + params["b2"], 0.0)
    ref = jax.nn.sigmoid(h2 @ params["w3"] + params["b3"])

    assert out.shape == (batch, num_classes), out.shape
    assert jnp.allclose(out, ref, atol=2e-2), "mismatch vs reference"

    print("KERNEL_OK")
</pallas_src>

<mosaic_0001>
module attributes {stable_mosaic.version = 11 : i64} {
  func.func @gene_selector_kernel(%arg0: i32, %arg1: memref<16x32xbf16, #tpu.memory_space<vmem>>, %arg2: memref<32x128xbf16, #tpu.memory_space<vmem>>, %arg3: memref<1x128xf32, #tpu.memory_space<vmem>>, %arg4: memref<128x128xbf16, #tpu.memory_space<vmem>>, %arg5: memref<1x128xf32, #tpu.memory_space<vmem>>, %arg6: memref<128x128xbf16, #tpu.memory_space<vmem>>, %arg7: memref<1x128xf32, #tpu.memory_space<vmem>>, %arg8: memref<16x128xf32, #tpu.memory_space<vmem>>) attributes {dimension_semantics = [#tpu.dimension_semantics<parallel>], iteration_bounds = array<i64: 1>, scalar_prefetch = 0 : i64, scratch_operands = 0 : i64, tpu.core_type = #tpu.core_type<tc>, window_params = [{transform_indices = @transform_0, window_bounds = array<i64: 16, 32>}, {pipeline_mode = #tpu.pipeline_mode<synchronous>, transform_indices = @transform_1, window_bounds = array<i64: 32, 128>}, {pipeline_mode = #tpu.pipeline_mode<synchronous>, transform_indices = @transform_2, window_bounds = array<i64: 1, 128>}, {pipeline_mode = #tpu.pipeline_mode<synchronous>, transform_indices = @transform_3, window_bounds = array<i64: 128, 128>}, {pipeline_mode = #tpu.pipeline_mode<synchronous>, transform_indices = @transform_4, window_bounds = array<i64: 1, 128>}, {pipeline_mode = #tpu.pipeline_mode<synchronous>, transform_indices = @transform_5, window_bounds = array<i64: 128, 128>}, {pipeline_mode = #tpu.pipeline_mode<synchronous>, transform_indices = @transform_6, window_bounds = array<i64: 1, 128>}, {transform_indices = @transform_7, window_bounds = array<i64: 16, 128>}]} {
    %c0 = arith.constant 0 : index
    %c0_0 = arith.constant 0 : index
    %0 = vector.load %arg1[%c0, %c0_0] : memref<16x32xbf16, #tpu.memory_space<vmem>>, vector<16x32xbf16>
    %c0_1 = arith.constant 0 : index
    %c0_2 = arith.constant 0 : index
    %1 = vector.load %arg2[%c0_1, %c0_2] : memref<32x128xbf16, #tpu.memory_space<vmem>>, vector<32x128xbf16>
    %cst = arith.constant dense<0.000000e+00> : vector<16x128xf32>
    %2 = tpu.matmul %0, %1, %cst {dimension_numbers = #tpu.dot_dimension_numbers<[1], [0], [0], [1], [0, 0, 1, 1], [], []>} : vector<16x32xbf16>, vector<32x128xbf16>, vector<16x128xf32> -> vector<16x128xf32>
    %c0_3 = arith.constant 0 : index
    %c0_4 = arith.constant 0 : index
    %3 = vector.load %arg3[%c0_3, %c0_4] : memref<1x128xf32, #tpu.memory_space<vmem>>, vector<1x128xf32>
    %4 = vector.broadcast %3 : vector<1x128xf32> to vector<16x128xf32>
    %5 = arith.addf %2, %4 : vector<16x128xf32>
    %cst_5 = arith.constant 0.000000e+00 : f32
    %6 = vector.broadcast %cst_5 : f32 to vector<16x128xf32>
    %7 = arith.maximumf %5, %6 : vector<16x128xf32>
    %8 = arith.truncf %7 : vector<16x128xf32> to vector<16x128xbf16>
    %c0_6 = arith.constant 0 : index
    %c0_7 = arith.constant 0 : index
    %9 = vector.load %arg4[%c0_6, %c0_7] : memref<128x128xbf16, #tpu.memory_space<vmem>>, vector<128x128xbf16>
    %cst_8 = arith.constant dense<0.000000e+00> : vector<16x128xf32>
    %10 = tpu.matmul %8, %9, %cst_8 {dimension_numbers = #tpu.dot_dimension_numbers<[1], [0], [0], [1], [0, 0, 1, 1], [], []>} : vector<16x128xbf16>, vector<128x128xbf16>, vector<16x128xf32> -> vector<16x128xf32>
    %c0_9 = arith.constant 0 : index
    %c0_10 = arith.constant 0 : index
    %11 = vector.load %arg5[%c0_9, %c0_10] : memref<1x128xf32, #tpu.memory_space<vmem>>, vector<1x128xf32>
    %12 = vector.broadcast %11 : vector<1x128xf32> to vector<16x128xf32>
    %13 = arith.addf %10, %12 : vector<16x128xf32>
    %cst_11 = arith.constant 0.000000e+00 : f32
    %14 = vector.broadcast %cst_11 : f32 to vector<16x128xf32>
    %15 = arith.maximumf %13, %14 : vector<16x128xf32>
    %16 = arith.truncf %15 : vector<16x128xf32> to vector<16x128xbf16>
    %c0_12 = arith.constant 0 : index
    %c0_13 = arith.constant 0 : index
    %17 = vector.load %arg6[%c0_12, %c0_13] : memref<128x128xbf16, #tpu.memory_space<vmem>>, vector<128x128xbf16>
    %cst_14 = arith.constant dense<0.000000e+00> : vector<16x128xf32>
    %18 = tpu.matmul %16, %17, %cst_14 {dimension_numbers = #tpu.dot_dimension_numbers<[1], [0], [0], [1], [0, 0, 1, 1], [], []>} : vector<16x128xbf16>, vector<128x128xbf16>, vector<16x128xf32> -> vector<16x128xf32>
    %c0_15 = arith.constant 0 : index
    %c0_16 = arith.constant 0 : index
    %19 = vector.load %arg7[%c0_15, %c0_16] : memref<1x128xf32, #tpu.memory_space<vmem>>, vector<1x128xf32>
    %20 = vector.broadcast %19 : vector<1x128xf32> to vector<16x128xf32>
    %21 = arith.addf %18, %20 : vector<16x128xf32>
    %22 = arith.negf %21 : vector<16x128xf32>
    %23 = math.exp %22 : vector<16x128xf32>
    %cst_17 = arith.constant 1.000000e+00 : f32
    %24 = vector.broadcast %cst_17 : f32 to vector<16x128xf32>
    %25 = arith.addf %24, %23 : vector<16x128xf32>
    %26 = arith.divf %24, %25 : vector<16x128xf32>
    %c0_18 = arith.constant 0 : index
    %c0_19 = arith.constant 0 : index
    %27 = vector.load %arg8[%c0_18, %c0_19] : memref<16x128xf32, #tpu.memory_space<vmem>>, vector<16x128xf32>
    tpu.vector_store %arg8[%c0_18, %c0_19], %26 {strides = array<i32>} : memref<16x128xf32, #tpu.memory_space<vmem>>, vector<16x128xf32>,
    return
  }
  func.func @transform_0(%arg0: i32) -> (i32, i32) {
    %c0_i32 = arith.constant 0 : i32
    %c0_i32_0 = arith.constant 0 : i32
    return %arg0, %c0_i32 : i32, i32
  }
  func.func @transform_1(%arg0: i32) -> (i32, i32) {
    %c0_i32 = arith.constant 0 : i32
    %c0_i32_0 = arith.constant 0 : i32
    %c0_i32_1 = arith.constant 0 : i32
    return %c0_i32, %c0_i32_0 : i32, i32
  }
  func.func @transform_2(%arg0: i32) -> (i32, i32) {
    %c0_i32 = arith.constant 0 : i32
    %c0_i32_0 = arith.constant 0 : i32
    %c0_i32_1 = arith.constant 0 : i32
    return %c0_i32, %c0_i32_0 : i32, i32
  }
  func.func @transform_3(%arg0: i32) -> (i32, i32) {
    %c0_i32 = arith.constant 0 : i32
    %c0_i32_0 = arith.constant 0 : i32
    %c0_i32_1 = arith.constant 0 : i32
    return %c0_i32, %c0_i32_0 : i32, i32
  }
  func.func @transform_4(%arg0: i32) -> (i32, i32) {
    %c0_i32 = arith.constant 0 : i32
    %c0_i32_0 = arith.constant 0 : i32
    %c0_i32_1 = arith.constant 0 : i32
    return %c0_i32, %c0_i32_0 : i32, i32
  }
  func.func @transform_5(%arg0: i32) -> (i32, i32) {
    %c0_i32 = arith.constant 0 : i32
    %c0_i32_0 = arith.constant 0 : i32
    %c0_i32_1 = arith.constant 0 : i32
    return %c0_i32, %c0_i32_0 : i32, i32
  }
  func.func @transform_6(%arg0: i32) -> (i32, i32) {
    %c0_i32 = arith.constant 0 : i32
    %c0_i32_0 = arith.constant 0 : i32
    %c0_i32_1 = arith.constant 0 : i32
    return %c0_i32, %c0_i32_0 : i32, i32
  }
  func.func @transform_7(%arg0: i32) -> (i32, i32) {
    %c0_i32 = arith.constant 0 : i32
    %c0_i32_0 = arith.constant 0 : i32
    return %arg0, %c0_i32 : i32, i32
  }
}

</mosaic_0001>

<bundles_post_ra>
// kernel: gene_selector_forward.1
= control target key start
LH: loop header
LB: loop body
LE: loop exit
PB: predicated region body
PF: predicated region fallthrough
CT: control target
= control target key end

     0   :  { %v473_v0 = vmov 0.0   ;;  %vm474_vm0 = vmmov 0   ;;  %vm57_vm1 = vcmask 261120   ;;  %s611_s1 = inlined_call_operand.vmem [shape: bf16[32,128], index: 1, kind: input, shape index: {}]   ;;  %s612_s3 = inlined_call_operand.vmem [shape: bf16[128,128], index: 3, kind: input, shape index: {}]   ;;  %s613_s0 = inlined_call_operand.vmem [shape: bf16[16,32], index: 0, kind: input, shape index: {}]   ;;  %s614_s5 = inlined_call_operand.vmem [shape: bf16[128,128], index: 5, kind: input, shape index: {}]   ;;  %s615_s2 = inlined_call_operand.vmem [shape: f32[1,128], index: 2, kind: input, shape index: {}]   ;;  %s616_s4 = inlined_call_operand.vmem [shape: f32[1,128], index: 4, kind: input, shape index: {}]   ;;  %s617_s6 = inlined_call_operand.vmem [shape: f32[1,128], index: 6, kind: input, shape index: {}]   ;;  %s618_s7 = inlined_call_operand.vmem [shape: f32[16,128], index: 7, kind: output, shape index: {}]  }
   0x1   :  { %396 = vmatprep.subr.bf16.mxu0 %v473_v0  ;;  %v446_v1 = vld [vmem:[%s611_s1] sm:$0xff]   ;;  %400 = vmatprep.mubr.msk.bf16.mxu0 %vm474_vm0, %v473_v0  ;;  %v447_v2 = vld [vmem:[%s611_s1 + $0x8] sm:$0xff]   ;;  %v451_v6 = vld [vmem:[%s612_s3 + $0x10] sm:$0xff]  }
   0x2   :  { %404 = vmatprep.subr.bf16.mxu1 %v473_v0  ;;  %420 = vmatprep.mubr.msk.bf16.mxu1 %vm474_vm0, %v473_v0  ;;  %v449_v3 = vld [vmem:[%s612_s3] sm:$0xff]   ;;  %v450_v5 = vld [vmem:[%s612_s3 + $0x8] sm:$0xff]   ;;  %v452_v7 = vld [vmem:[%s612_s3 + $0x18] sm:$0xff]  }
   0x3   :  { %397 = vmatpush3.bf16.msra.mxu0 %v446_v1  ;;  %v448_v4 = vld [vmem:[%s613_s0] sm:$0xff]   ;;  %405 = vmatpush3.bf16.msra.mxu1 %v449_v3  ;;  %v454_v9 = vld [vmem:[%s612_s3 + $0x28] sm:$0xff]   ;;  %v455_v10 = vld [vmem:[%s612_s3 + $0x30] sm:$0xff]  }
   0x4   :  { %398 = vmatprep.subr.bf16.mxu0 %v473_v0  ;;  %406 = vmatprep.subr.bf16.mxu1 %v473_v0  ;;  %v453_v8 = vld [vmem:[%s612_s3 + $0x20] sm:$0xff]   ;;  %v456_v11 = vld [vmem:[%s612_s3 + $0x38] sm:$0xff]   ;;  %v458_v13 = vld [vmem:[%s614_s5 + $0x8] sm:$0xff]  }
   0x5   :  { %v457_v12 = vld [vmem:[%s614_s5] sm:$0xff]   ;;  %v459_v14 = vld [vmem:[%s614_s5 + $0x10] sm:$0xff]   ;;  %v460_v15 = vld [vmem:[%s614_s5 + $0x18] sm:$0xff]  }
   0x6   :  { %v461_v16 = vld [vmem:[%s614_s5 + $0x20] sm:$0xff]   ;;  %v462_v17 = vld [vmem:[%s614_s5 + $0x28] sm:$0xff]   ;;  %v463_v28 = vld [vmem:[%s614_s5 + $0x30] sm:$0xff]  }
   0x7   :  { %399 = vmatpush3.bf16.msra.mxu0 %v447_v2  ;;  %407 = vmatpush3.bf16.msra.mxu1 %v450_v5  ;;  %v350_v18 = vld [vmem:[%s615_s2] ss:$0 sm:$0xff]  ;;  %v464_v29 = vld [vmem:[%s614_s5 + $0x38] sm:$0xff]  }
   0x8   :  { %424 = vmatprep.subr.bf16.mxu0 %v473_v0  ;;  %408 = vmatprep.subr.bf16.mxu1 %v473_v0  ;;  %v355_v30 = vld [vmem:[%s616_s4] ss:$0 sm:$0xff] }
   0x9   :  { %v364_v40 = vld [vmem:[%s617_s6] ss:$0 sm:$0xff] }
   0xa   :  { %401 = vmatmul.mubr.msk.bf16.vlgmr.msra.gmra.mrb[0].mxu0 %vm57_vm1, %v448_v4 }
   0xb   :  { %440 = vmatprep.mubr.msk.bf16.mxu0 %vm474_vm0, %v473_v0  ;;  %409 = vmatpush3.bf16.msra.mxu1 %v451_v6 }
   0xc   :  { %410 = vmatprep.subr.bf16.mxu1 %v473_v0  ;;  %425 = vmatpush3.bf16.msra.mxu0 %v457_v12 }
   0xd   :  { %426 = vmatprep.subr.bf16.mxu0 %v473_v0 }
   0xf   :  { %411 = vmatpush3.bf16.msra.mxu1 %v452_v7 }
  0x10   :  { %412 = vmatprep.subr.bf16.mxu1 %v473_v0  ;;  %427 = vmatpush3.bf16.msra.mxu0 %v458_v13 }
  0x11   :  { %428 = vmatprep.subr.bf16.mxu0 %v473_v0 }
  0x13   :  { %413 = vmatpush3.bf16.msra.mxu1 %v453_v8 }
  0x14   :  { %414 = vmatprep.subr.bf16.mxu1 %v473_v0  ;;  %429 = vmatpush3.bf16.msra.mxu0 %v459_v14 }
  0x15   :  { %430 = vmatprep.subr.bf16.mxu0 %v473_v0 }
  0x17   :  { %415 = vmatpush3.bf16.msra.mxu1 %v454_v9 }
  0x18   :  { %416 = vmatprep.subr.bf16.mxu1 %v473_v0  ;;  %431 = vmatpush3.bf16.msra.mxu0 %v460_v15 }
  0x19   :  { %432 = vmatprep.subr.bf16.mxu0 %v473_v0 }
  0x1b   :  { %417 = vmatpush3.bf16.msra.mxu1 %v455_v10 }
  0x1c   :  { %418 = vmatprep.subr.bf16.mxu1 %v473_v0  ;;  %433 = vmatpush3.bf16.msra.mxu0 %v461_v16 }
  0x1d   :  { %434 = vmatprep.subr.bf16.mxu0 %v473_v0 }
  0x1f   :  { %419 = vmatpush3.bf16.msra.mxu1 %v456_v11 }
  0x20   :  { %435 = vmatpush3.bf16.msra.mxu0 %v462_v17 }
  0x21   :  { %436 = vmatprep.subr.bf16.mxu0 %v473_v0 }
  0x24   :  { %437 = vmatpush3.bf16.msra.mxu0 %v463_v28 }
  0x25   :  { %438 = vmatprep.subr.bf16.mxu0 %v473_v0 }
  0x28   :  { %439 = vmatpush3.bf16.msra.mxu0 %v464_v29 }
  0xdd   :  { %v95_v19 = vpop.f32.mrb[0].mxu0 }
  0xde   :  { %v96_v20 = vadd.f32 %v350_v18, %v95_v19  ;;  %v402_v21 = vpop.f32.mrb[1].mxu0 }
  0xdf   :  { %v98_v22 = vpop.f32.mrb[2].mxu0 }
  0xe0   :  { %v99_v23 = vadd.f32 %v350_v18, %v98_v22  ;;  %v403_v24 = vpop.f32.mrb[3].mxu0  ;;  %v102_v25 = vmax.f32 %v96_v20, 0.0 }
  0xe2   :  { %v103_v26 = vmax.f32 %v99_v23, 0.0 }
  0xe4   :  { %v104_v27 = vpack.c.bf16 %v103_v26, %v102_v25 }
  0xe6   :  { %421 = vmatmul.mubr.bf16.vlgmr.msra.gmra.mrb[0].mxu1 %v104_v27 }
 0x1b9   :  { %v210_v31 = vpop.f32.mrb[0].mxu1 }
 0x1ba   :  { %v211_v32 = vadd.f32 %v355_v30, %v210_v31  ;;  %v422_v33 = vpop.f32.mrb[1].mxu1 }
 0x1bb   :  { %v213_v34 = vpop.f32.mrb[2].mxu1 }
 0x1bc   :  { %v214_v35 = vadd.f32 %v355_v30, %v213_v34  ;;  %v423_v36 = vpop.f32.mrb[3].mxu1  ;;  %v217_v37 = vmax.f32 %v211_v32, 0.0 }
 0x1be   :  { %v218_v38 = vmax.f32 %v214_v35, 0.0 }
 0x1c0   :  { %v219_v39 = vpack.c.bf16 %v218_v38, %v217_v37 }
 0x1c2   :  { %441 = vmatmul.mubr.bf16.vlgmr.msra.gmra.mrb[4].mxu0 %v219_v39 }
 0x295   :  { %v325_v41 = vpop.f32.mrb[4].mxu0 }
 0x296   :  { %v326_v42 = vadd.f32 %v364_v40, %v325_v41  ;;  %v442_v43 = vpop.f32.mrb[5].mxu0 }
 0x297   :  { %v328_v44 = vpop.f32.mrb[6].mxu0 }
 0x298   :  { %v373_v45 = vmul.f32 -1.442695, %v326_v42  ;;  %v329_v46 = vadd.f32 %v364_v40, %v328_v44  ;;  %v443_v47 = vpop.f32.mrb[7].mxu0 }
 0x29a   :  { %465 = vpow2.f32 %v373_v45  ;;  %v374_v48 = vmul.f32 -1.442695, %v329_v46 }
 0x29c   :  { %467 = vpow2.f32 %v374_v48 }
 0x2a4   :  { %v466_v49 = vpop.eup %465 }
 0x2a5   :  { %v338_v50 = vadd.f32 1.0, %v466_v49 }
 0x2a6   :  { %v468_v51 = vpop.eup %467 }
 0x2a7   :  { %469 = vrcp.f32 %v338_v50  ;;  %v339_v52 = vadd.f32 1.0, %v468_v51 }
 0x2a9   :  { %471 = vrcp.f32 %v339_v52 }
 0x2b1   :  { %v470_v53 = vpop.eup %469 }
 0x2b2   :  { %344 = vst [vmem:[%s618_s7] sm:$0xff] %v470_v53 }
 0x2b3   :  { %v472_v54 = vpop.eup %471 }
 0x2b4   :  { %345 = vst [vmem:[%s618_s7 + $0x8] sm:$0xff] %v472_v54 }

</bundles_post_ra>
